<compile_context>
chip_gen: v7x
topology: tpu7x:2x2x1
jax: 0.10.0
libtpu: 0.0.40
codegen_flags: <defaults>
</compile_context>

<pallas_src>
import functools
import math

import jax
import jax.numpy as jnp
import numpy as np
from jax import lax
from jax.experimental import pallas as pl
from jax.experimental.pallas import tpu as pltpu


# ---------------------------------------------------------------------------
# RoPE tables (host-side, tiny).
# ---------------------------------------------------------------------------
def rope_tables(S, Dh):
    pos = jnp.arange(S, dtype=jnp.float32)
    inv_freq = 1.0 / (10000.0 ** (jnp.arange(0, Dh, 2, dtype=jnp.float32) / Dh))
    ang = pos[:, None] * inv_freq[None, :]                        # (S, Dh/2)
    cos = jnp.concatenate([jnp.cos(ang), jnp.cos(ang)], axis=-1)  # (S, Dh)
    sin = jnp.concatenate([jnp.sin(ang), jnp.sin(ang)], axis=-1)
    return cos, sin


# ---------------------------------------------------------------------------
# Fused per-batch kernel: qkv proj -> RoPE -> attention -> out proj.
# ---------------------------------------------------------------------------
def _fused_attn_kernel(x_ref, mask_ref, w_qkv_ref, b_qkv_ref, w_out_ref,
                       b_out_ref, cosq_ref, sinq_ref, cosk_ref, sink_ref,
                       o_ref, *, num_heads, is_causal):
    x = x_ref[0]                                # (S, E) f32
    S, E = x.shape
    H = num_heads
    Dh = E // H

    # --- fused QKV projection: x @ W_qkv^T + b (contract last dims; no
    #     materialized weight transpose) -------------------------------------
    qkv = lax.dot_general(
        x, w_qkv_ref[...], (((1,), (1,)), ((), ())),
        preferred_element_type=jnp.float32,
    ) + b_qkv_ref[...]                          # (S, 3E)

    cq, sq = cosq_ref[...], sinq_ref[...]       # (S, Dh), 1/sqrt(Dh) folded in
    ck, sk = cosk_ref[...], sink_ref[...]

    def rope(t, c, s_):                         # GPT-NeoX half-split rotation
        t1 = t[:, : Dh // 2]
        t2 = t[:, Dh // 2:]
        return t * c + jnp.concatenate([-t2, t1], axis=-1) * s_

    # Heads = static lane slices of the packed (S, 3E) activation; stacking
    # along a new leading axis is a cheap major-dim concat (no lane shuffles).
    qs, ks, vs = [], [], []
    for h in range(H):
        lo = h * Dh
        qs.append(rope(qkv[:, lo:lo + Dh], cq, sq))              # pre-scaled q
        ks.append(rope(qkv[:, E + lo:E + lo + Dh], ck, sk))
        vs.append(qkv[:, 2 * E + lo:2 * E + lo + Dh])
    q = jnp.stack(qs, axis=0)                   # (H, S, Dh)
    k = jnp.stack(ks, axis=0)
    v = jnp.stack(vs, axis=0)

    # --- attention for all heads in one batched einsum ----------------------
    s = jnp.einsum('hqd,hkd->hqk', q, k,
                   preferred_element_type=jnp.float32)           # (H, S, S)

    if is_causal:
        row = lax.broadcasted_iota(jnp.int32, (S, S), 0)
        col = lax.broadcasted_iota(jnp.int32, (S, S), 1)
        keep = (col <= row)[None]               # (1, S, S), lower-triangular
    else:
        keep = mask_ref[...] > 0.0              # (1, 1, S) broadcasts over q,h
    # finite fill value -> no NaN even if a row were fully masked
    s = jnp.where(keep, s, -1e30)

    # single softmax chain over all heads
    m = jnp.max(s, axis=-1, keepdims=True)
    p = jnp.exp(s - m)
    inv = pl.reciprocal(jnp.sum(p, axis=-1, keepdims=True), approx=True)
    y = jnp.einsum('hqk,hkd->hqd', p * inv, v,
                   preferred_element_type=jnp.float32)           # (H, S, Dh)

    # Re-pack heads along lanes -> one lane-dense (S, E) operand / store.
    y2 = jnp.concatenate([y[h] for h in range(H)], axis=-1)      # (S, E)

    # --- fused output projection: y @ W_out^T + b ---------------------------
    out = lax.dot_general(
        y2, w_out_ref[...], (((1,), (1,)), ((), ())),
        preferred_element_type=jnp.float32,
    ) + b_out_ref[...]
    o_ref[0] = out.astype(o_ref.dtype)          # single wide (S, E) store


def attention_forward(x, attn_mask, is_causal, params, num_heads):
    B, S, E = x.shape
    H = num_heads
    Dh = E // H
    scale = 1.0 / math.sqrt(Dh)

    cos, sin = rope_tables(S, Dh)
    cosq, sinq = cos * scale, sin * scale       # fold softmax scale into q RoPE
    mask3 = attn_mask.astype(jnp.float32).reshape(B, 1, S)
    b_qkv = params["b_qkv"].reshape(1, 3 * E)
    b_out = params["b_out"].reshape(1, E)

    kernel = functools.partial(_fused_attn_kernel, num_heads=H,
                               is_causal=bool(is_causal))

    return pl.pallas_call(
        kernel,
        out_shape=jax.ShapeDtypeStruct((B, S, E), x.dtype),
        grid=(B,),
        in_specs=[
            pl.BlockSpec((1, S, E), lambda b: (b, 0, 0)),     # x
            pl.BlockSpec((1, 1, S), lambda b: (b, 0, 0)),     # key-padding mask
            pl.BlockSpec((3 * E, E), lambda b: (0, 0)),       # w_qkv (out, in)
            pl.BlockSpec((1, 3 * E), lambda b: (0, 0)),       # b_qkv
            pl.BlockSpec((E, E), lambda b: (0, 0)),           # w_out (out, in)
            pl.BlockSpec((1, E), lambda b: (0, 0)),           # b_out
            pl.BlockSpec((S, Dh), lambda b: (0, 0)),          # cos (q, scaled)
            pl.BlockSpec((S, Dh), lambda b: (0, 0)),          # sin (q, scaled)
            pl.BlockSpec((S, Dh), lambda b: (0, 0)),          # cos (k)
            pl.BlockSpec((S, Dh), lambda b: (0, 0)),          # sin (k)
        ],
        out_specs=pl.BlockSpec((1, S, E), lambda b: (b, 0, 0)),
        compiler_params=pltpu.CompilerParams(
            dimension_semantics=("parallel",)),  # both v7x TCs split the batch
    )(x, mask3, params["w_qkv"], b_qkv, params["w_out"], b_out,
      cosq, sinq, cos, sin)


# ---------------------------------------------------------------------------
# Pure-JAX reference (mirrors the PyTorch forward at eval time).
# ---------------------------------------------------------------------------
def reference_forward(x, attn_mask, is_causal, params, num_heads):
    B, S, E = x.shape
    H = num_heads
    Dh = E // H
    qkv = x @ params["w_qkv"].T + params["b_qkv"]
    q, k, v = jnp.split(qkv, 3, axis=-1)
    q = q.reshape(B, S, H, Dh)
    k = k.reshape(B, S, H, Dh)
    v = v.reshape(B, S, H, Dh)

    cos, sin = rope_tables(S, Dh)  # (S, Dh)

    def rope(t):  # t: (B, S, H, Dh)
        t1 = t[..., : Dh // 2]
        t2 = t[..., Dh // 2:]
        rot = jnp.concatenate([-t2, t1], axis=-1)
        return t * cos[None, :, None, :] + rot * sin[None, :, None, :]

    q, k = rope(q), rope(k)
    q = q.transpose(0, 2, 1, 3)
    k = k.transpose(0, 2, 1, 3)
    v = v.transpose(0, 2, 1, 3)

    att = jnp.einsum("bhqd,bhkd->bhqk", q, k) / math.sqrt(Dh)
    if is_causal:
        keep = jnp.tril(jnp.ones((S, S), dtype=bool))[None, None]
    else:
        keep = attn_mask[:, None, None, :].astype(bool)
    att = jnp.where(keep, att, -jnp.inf)
    probs = jax.nn.softmax(att, axis=-1)
    y = jnp.einsum("bhqk,bhkd->bhqd", probs, v)
    y = y.transpose(0, 2, 1, 3).reshape(B, S, E)
    return y @ params["w_out"].T + params["b_out"]


# ---------------------------------------------------------------------------
if __name__ == "__main__":
    B, S, E, H = 2, 8, 32, 4       # block_size = 8, head_dim = 8
    key = jax.random.PRNGKey(0)
    kx, kw1, kb1, kw2, kb2, km = jax.random.split(key, 6)

    x = jax.random.normal(kx, (B, S, E), dtype=jnp.float32)

    bound = 1.0 / math.sqrt(E)
    params = {
        "w_qkv": jax.random.uniform(kw1, (3 * E, E), jnp.float32, -bound, bound),
        "b_qkv": jax.random.uniform(kb1, (3 * E,), jnp.float32, -bound, bound),
        "w_out": jax.random.uniform(kw2, (E, E), jnp.float32, -bound, bound),
        "b_out": jax.random.uniform(kb2, (E,), jnp.float32, -bound, bound),
    }

    # key-padding mask: first batch fully valid, second has last 3 tokens masked
    attn_mask = jnp.array(
        [[1] * S, [1] * (S - 3) + [0] * 3], dtype=jnp.bool_
    )

    # causal path (attn_mask ignored, like PyTorch)
    y_causal = attention_forward(x, attn_mask, True, params, H)
    jax.block_until_ready(y_causal)
    y_causal_ref = reference_forward(x, attn_mask, True, params, H)

    # non-causal path with key padding mask
    y_masked = attention_forward(x, attn_mask, False, params, H)
    jax.block_until_ready(y_masked)
    y_masked_ref = reference_forward(x, attn_mask, False, params, H)

    np.testing.assert_allclose(np.asarray(y_causal), np.asarray(y_causal_ref),
                               rtol=5e-3, atol=5e-3)
    np.testing.assert_allclose(np.asarray(y_masked), np.asarray(y_masked_ref),
                               rtol=5e-3, atol=5e-3)

    print("KERNEL_OK")
</pallas_src>

<mosaic_0001>
module attributes {stable_mosaic.version = 11 : i64} {
  func.func @_fused_attn_kernel(%arg0: i32, %arg1: memref<1x8x32xf32, #tpu.memory_space<vmem>>, %arg2: memref<1x1x8xf32, #tpu.memory_space<vmem>>, %arg3: memref<96x32xf32, #tpu.memory_space<vmem>>, %arg4: memref<1x96xf32, #tpu.memory_space<vmem>>, %arg5: memref<32x32xf32, #tpu.memory_space<vmem>>, %arg6: memref<1x32xf32, #tpu.memory_space<vmem>>, %arg7: memref<8x8xf32, #tpu.memory_space<vmem>>, %arg8: memref<8x8xf32, #tpu.memory_space<vmem>>, %arg9: memref<8x8xf32, #tpu.memory_space<vmem>>, %arg10: memref<8x8xf32, #tpu.memory_space<vmem>>, %arg11: memref<1x8x32xf32, #tpu.memory_space<vmem>>) attributes {dimension_semantics = [#tpu.dimension_semantics<parallel>], iteration_bounds = array<i64: 2>, scalar_prefetch = 0 : i64, scratch_operands = 0 : i64, tpu.core_type = #tpu.core_type<tc>, window_params = [{transform_indices = @transform_0, window_bounds = array<i64: 1, 8, 32>}, {transform_indices = @transform_1, window_bounds = array<i64: 1, 1, 8>}, {pipeline_mode = #tpu.pipeline_mode<synchronous>, transform_indices = @transform_2, window_bounds = array<i64: 96, 32>}, {pipeline_mode = #tpu.pipeline_mode<synchronous>, transform_indices = @transform_3, window_bounds = array<i64: 1, 96>}, {pipeline_mode = #tpu.pipeline_mode<synchronous>, transform_indices = @transform_4, window_bounds = array<i64: 32, 32>}, {pipeline_mode = #tpu.pipeline_mode<synchronous>, transform_indices = @transform_5, window_bounds = array<i64: 1, 32>}, {pipeline_mode = #tpu.pipeline_mode<synchronous>, transform_indices = @transform_6, window_bounds = array<i64: 8, 8>}, {pipeline_mode = #tpu.pipeline_mode<synchronous>, transform_indices = @transform_7, window_bounds = array<i64: 8, 8>}, {pipeline_mode = #tpu.pipeline_mode<synchronous>, transform_indices = @transform_8, window_bounds = array<i64: 8, 8>}, {pipeline_mode = #tpu.pipeline_mode<synchronous>, transform_indices = @transform_9, window_bounds = array<i64: 8, 8>}, {transform_indices = @transform_10, window_bounds = array<i64: 1, 8, 32>}]} {
    %c0 = arith.constant 0 : index
    %c0_0 = arith.constant 0 : index
    %c0_1 = arith.constant 0 : index
    %0 = vector.load %arg1[%c0, %c0_0, %c0_1] : memref<1x8x32xf32, #tpu.memory_space<vmem>>, vector<1x8x32xf32>
    %1 = vector.shape_cast %0 : vector<1x8x32xf32> to vector<8x32xf32>
    %c0_2 = arith.constant 0 : index
    %c0_3 = arith.constant 0 : index
    %2 = vector.load %arg3[%c0_2, %c0_3] : memref<96x32xf32, #tpu.memory_space<vmem>>, vector<96x32xf32>
    %cst = arith.constant dense<0.000000e+00> : vector<8x96xf32>
    %3 = tpu.matmul %1, %2, %cst {dimension_numbers = #tpu.dot_dimension_numbers<[1], [1], [0], [0], [0, 0, 1, 0], [], []>} : vector<8x32xf32>, vector<96x32xf32>, vector<8x96xf32> -> vector<8x96xf32>
    %c0_4 = arith.constant 0 : index
    %c0_5 = arith.constant 0 : index
    %4 = vector.load %arg4[%c0_4, %c0_5] : memref<1x96xf32, #tpu.memory_space<vmem>>, vector<1x96xf32>
    %5 = vector.broadcast %4 : vector<1x96xf32> to vector<8x96xf32>
    %6 = arith.addf %3, %5 : vector<8x96xf32>
    %c0_6 = arith.constant 0 : index
    %c0_7 = arith.constant 0 : index
    %7 = vector.load %arg7[%c0_6, %c0_7] : memref<8x8xf32, #tpu.memory_space<vmem>>, vector<8x8xf32>
    %c0_8 = arith.constant 0 : index
    %c0_9 = arith.constant 0 : index
    %8 = vector.load %arg8[%c0_8, %c0_9] : memref<8x8xf32, #tpu.memory_space<vmem>>, vector<8x8xf32>
    %c0_10 = arith.constant 0 : index
    %c0_11 = arith.constant 0 : index
    %9 = vector.load %arg9[%c0_10, %c0_11] : memref<8x8xf32, #tpu.memory_space<vmem>>, vector<8x8xf32>
    %c0_12 = arith.constant 0 : index
    %c0_13 = arith.constant 0 : index
    %10 = vector.load %arg10[%c0_12, %c0_13] : memref<8x8xf32, #tpu.memory_space<vmem>>, vector<8x8xf32>
    %11 = vector.extract_strided_slice %6 {offsets = [0, 0], sizes = [8, 8], strides = [1, 1]} : vector<8x96xf32> to vector<8x8xf32>
    %12 = vector.extract_strided_slice %11 {offsets = [0, 0], sizes = [8, 4], strides = [1, 1]} : vector<8x8xf32> to vector<8x4xf32>
    %13 = vector.extract_strided_slice %11 {offsets = [0, 4], sizes = [8, 4], strides = [1, 1]} : vector<8x8xf32> to vector<8x4xf32>
    %14 = arith.mulf %11, %7 : vector<8x8xf32>
    %cst_14 = arith.constant 0.000000e+00 : f32
    %15 = vector.broadcast %cst_14 : f32 to vector<8x4xf32>
    %16 = arith.subf %15, %13 : vector<8x4xf32>
    %17 = tpu.concatenate %16, %12 in 1 : vector<8x4xf32>, vector<8x4xf32> -> vector<8x8xf32>
    %18 = arith.mulf %17, %8 : vector<8x8xf32>
    %19 = arith.addf %14, %18 : vector<8x8xf32>
    %20 = vector.extract_strided_slice %6 {offsets = [0, 32], sizes = [8, 8], strides = [1, 1]} : vector<8x96xf32> to vector<8x8xf32>
    %21 = vector.extract_strided_slice %20 {offsets = [0, 0], sizes = [8, 4], strides = [1, 1]} : vector<8x8xf32> to vector<8x4xf32>
    %22 = vector.extract_strided_slice %20 {offsets = [0, 4], sizes = [8, 4], strides = [1, 1]} : vector<8x8xf32> to vector<8x4xf32>
    %23 = arith.mulf %20, %9 : vector<8x8xf32>
    %cst_15 = arith.constant 0.000000e+00 : f32
    %24 = vector.broadcast %cst_15 : f32 to vector<8x4xf32>
    %25 = arith.subf %24, %22 : vector<8x4xf32>
    %26 = tpu.concatenate %25, %21 in 1 : vector<8x4xf32>, vector<8x4xf32> -> vector<8x8xf32>
    %27 = arith.mulf %26, %10 : vector<8x8xf32>
    %28 = arith.addf %23, %27 : vector<8x8xf32>
    %29 = vector.extract_strided_slice %6 {offsets = [0, 64], sizes = [8, 8], strides = [1, 1]} : vector<8x96xf32> to vector<8x8xf32>
    %30 = vector.extract_strided_slice %6 {offsets = [0, 8], sizes = [8, 8], strides = [1, 1]} : vector<8x96xf32> to vector<8x8xf32>
    %31 = vector.extract_strided_slice %30 {offsets = [0, 0], sizes = [8, 4], strides = [1, 1]} : vector<8x8xf32> to vector<8x4xf32>
    %32 = vector.extract_strided_slice %30 {offsets = [0, 4], sizes = [8, 4], strides = [1, 1]} : vector<8x8xf32> to vector<8x4xf32>
    %33 = arith.mulf %30, %7 : vector<8x8xf32>
    %cst_16 = arith.constant 0.000000e+00 : f32
    %34 = vector.broadcast %cst_16 : f32 to vector<8x4xf32>
    %35 = arith.subf %34, %32 : vector<8x4xf32>
    %36 = tpu.concatenate %35, %31 in 1 : vector<8x4xf32>, vector<8x4xf32> -> vector<8x8xf32>
    %37 = arith.mulf %36, %8 : vector<8x8xf32>
    %38 = arith.addf %33, %37 : vector<8x8xf32>
    %39 = vector.extract_strided_slice %6 {offsets = [0, 40], sizes = [8, 8], strides = [1, 1]} : vector<8x96xf32> to vector<8x8xf32>
    %40 = vector.extract_strided_slice %39 {offsets = [0, 0], sizes = [8, 4], strides = [1, 1]} : vector<8x8xf32> to vector<8x4xf32>
    %41 = vector.extract_strided_slice %39 {offsets = [0, 4], sizes = [8, 4], strides = [1, 1]} : vector<8x8xf32> to vector<8x4xf32>
    %42 = arith.mulf %39, %9 : vector<8x8xf32>
    %cst_17 = arith.constant 0.000000e+00 : f32
    %43 = vector.broadcast %cst_17 : f32 to vector<8x4xf32>
    %44 = arith.subf %43, %41 : vector<8x4xf32>
    %45 = tpu.concatenate %44, %40 in 1 : vector<8x4xf32>, vector<8x4xf32> -> vector<8x8xf32>
    %46 = arith.mulf %45, %10 : vector<8x8xf32>
    %47 = arith.addf %42, %46 : vector<8x8xf32>
    %48 = vector.extract_strided_slice %6 {offsets = [0, 72], sizes = [8, 8], strides = [1, 1]} : vector<8x96xf32> to vector<8x8xf32>
    %49 = vector.extract_strided_slice %6 {offsets = [0, 16], sizes = [8, 8], strides = [1, 1]} : vector<8x96xf32> to vector<8x8xf32>
    %50 = vector.extract_strided_slice %49 {offsets = [0, 0], sizes = [8, 4], strides = [1, 1]} : vector<8x8xf32> to vector<8x4xf32>
    %51 = vector.extract_strided_slice %49 {offsets = [0, 4], sizes = [8, 4], strides = [1, 1]} : vector<8x8xf32> to vector<8x4xf32>
    %52 = arith.mulf %49, %7 : vector<8x8xf32>
    %cst_18 = arith.constant 0.000000e+00 : f32
    %53 = vector.broadcast %cst_18 : f32 to vector<8x4xf32>
    %54 = arith.subf %53, %51 : vector<8x4xf32>
    %55 = tpu.concatenate %54, %50 in 1 : vector<8x4xf32>, vector<8x4xf32> -> vector<8x8xf32>
    %56 = arith.mulf %55, %8 : vector<8x8xf32>
    %57 = arith.addf %52, %56 : vector<8x8xf32>
    %58 = vector.extract_strided_slice %6 {offsets = [0, 48], sizes = [8, 8], strides = [1, 1]} : vector<8x96xf32> to vector<8x8xf32>
    %59 = vector.extract_strided_slice %58 {offsets = [0, 0], sizes = [8, 4], strides = [1, 1]} : vector<8x8xf32> to vector<8x4xf32>
    %60 = vector.extract_strided_slice %58 {offsets = [0, 4], sizes = [8, 4], strides = [1, 1]} : vector<8x8xf32> to vector<8x4xf32>
    %61 = arith.mulf %58, %9 : vector<8x8xf32>
    %cst_19 = arith.constant 0.000000e+00 : f32
    %62 = vector.broadcast %cst_19 : f32 to vector<8x4xf32>
    %63 = arith.subf %62, %60 : vector<8x4xf32>
    %64 = tpu.concatenate %63, %59 in 1 : vector<8x4xf32>, vector<8x4xf32> -> vector<8x8xf32>
    %65 = arith.mulf %64, %10 : vector<8x8xf32>
    %66 = arith.addf %61, %65 : vector<8x8xf32>
    %67 = vector.extract_strided_slice %6 {offsets = [0, 80], sizes = [8, 8], strides = [1, 1]} : vector<8x96xf32> to vector<8x8xf32>
    %68 = vector.extract_strided_slice %6 {offsets = [0, 24], sizes = [8, 8], strides = [1, 1]} : vector<8x96xf32> to vector<8x8xf32>
    %69 = vector.extract_strided_slice %68 {offsets = [0, 0], sizes = [8, 4], strides = [1, 1]} : vector<8x8xf32> to vector<8x4xf32>
    %70 = vector.extract_strided_slice %68 {offsets = [0, 4], sizes = [8, 4], strides = [1, 1]} : vector<8x8xf32> to vector<8x4xf32>
    %71 = arith.mulf %68, %7 : vector<8x8xf32>
    %cst_20 = arith.constant 0.000000e+00 : f32
    %72 = vector.broadcast %cst_20 : f32 to vector<8x4xf32>
    %73 = arith.subf %72, %70 : vector<8x4xf32>
    %74 = tpu.concatenate %73, %69 in 1 : vector<8x4xf32>, vector<8x4xf32> -> vector<8x8xf32>
    %75 = arith.mulf %74, %8 : vector<8x8xf32>
    %76 = arith.addf %71, %75 : vector<8x8xf32>
    %77 = vector.extract_strided_slice %6 {offsets = [0, 56], sizes = [8, 8], strides = [1, 1]} : vector<8x96xf32> to vector<8x8xf32>
    %78 = vector.extract_strided_slice %77 {offsets = [0, 0], sizes = [8, 4], strides = [1, 1]} : vector<8x8xf32> to vector<8x4xf32>
    %79 = vector.extract_strided_slice %77 {offsets = [0, 4], sizes = [8, 4], strides = [1, 1]} : vector<8x8xf32> to vector<8x4xf32>
    %80 = arith.mulf %77, %9 : vector<8x8xf32>
    %cst_21 = arith.constant 0.000000e+00 : f32
    %81 = vector.broadcast %cst_21 : f32 to vector<8x4xf32>
    %82 = arith.subf %81, %79 : vector<8x4xf32>
    %83 = tpu.concatenate %82, %78 in 1 : vector<8x4xf32>, vector<8x4xf32> -> vector<8x8xf32>
    %84 = arith.mulf %83, %10 : vector<8x8xf32>
    %85 = arith.addf %80, %84 : vector<8x8xf32>
    %86 = vector.extract_strided_slice %6 {offsets = [0, 88], sizes = [8, 8], strides = [1, 1]} : vector<8x96xf32> to vector<8x8xf32>
    %87 = vector.shape_cast %19 : vector<8x8xf32> to vector<1x8x8xf32>
    %88 = vector.shape_cast %38 : vector<8x8xf32> to vector<1x8x8xf32>
    %89 = vector.shape_cast %57 : vector<8x8xf32> to vector<1x8x8xf32>
    %90 = vector.shape_cast %76 : vector<8x8xf32> to vector<1x8x8xf32>
    %91 = tpu.concatenate %87, %88, %89, %90 in 0 : vector<1x8x8xf32>, vector<1x8x8xf32>, vector<1x8x8xf32>, vector<1x8x8xf32> -> vector<4x8x8xf32>
    %92 = vector.shape_cast %28 : vector<8x8xf32> to vector<1x8x8xf32>
    %93 = vector.shape_cast %47 : vector<8x8xf32> to vector<1x8x8xf32>
    %94 = vector.shape_cast %66 : vector<8x8xf32> to vector<1x8x8xf32>
    %95 = vector.shape_cast %85 : vector<8x8xf32> to vector<1x8x8xf32>
    %96 = tpu.concatenate %92, %93, %94, %95 in 0 : vector<1x8x8xf32>, vector<1x8x8xf32>, vector<1x8x8xf32>, vector<1x8x8xf32> -> vector<4x8x8xf32>
    %97 = vector.shape_cast %29 : vector<8x8xf32> to vector<1x8x8xf32>
    %98 = vector.shape_cast %48 : vector<8x8xf32> to vector<1x8x8xf32>
    %99 = vector.shape_cast %67 : vector<8x8xf32> to vector<1x8x8xf32>
    %100 = vector.shape_cast %86 : vector<8x8xf32> to vector<1x8x8xf32>
    %101 = tpu.concatenate %97, %98, %99, %100 in 0 : vector<1x8x8xf32>, vector<1x8x8xf32>, vector<1x8x8xf32>, vector<1x8x8xf32> -> vector<4x8x8xf32>
    "tpu.trace_start"() <{level = 10 : i32, message = "hqd,hkd->hqk"}> : () -> ()
    %cst_22 = arith.constant dense<0.000000e+00> : vector<4x8x8xf32>
    %102 = tpu.matmul %91, %96, %cst_22 {dimension_numbers = #tpu.dot_dimension_numbers<[2], [2], [1], [1], [0, 0, 0, 1, 1, 1], [0], [0]>} : vector<4x8x8xf32>, vector<4x8x8xf32>, vector<4x8x8xf32> -> vector<4x8x8xf32>
    "tpu.trace_stop"() : () -> ()
    %103 = tpu.iota {dimensions = array<i32: 0>} : vector<8x8xi32>
    %104 = tpu.iota {dimensions = array<i32: 1>} : vector<8x8xi32>
    %105 = arith.cmpi sle, %104, %103 : vector<8x8xi32>
    %106 = vector.shape_cast %105 : vector<8x8xi1> to vector<1x8x8xi1>
    %cst_23 = arith.constant -1.000000e+30 : f32
    %107 = vector.shape_cast %106 : vector<1x8x8xi1> to vector<1x8x8xi1>
    %108 = vector.broadcast %107 : vector<1x8x8xi1> to vector<4x8x8xi1>
    %109 = vector.broadcast %cst_23 : f32 to vector<4x8x8xf32>
    %110 = arith.select %108, %102, %109 : vector<4x8x8xi1>, vector<4x8x8xf32>
    %cst_24 = arith.constant dense<0xFF800000> : vector<4x8xf32>
    %111 = vector.multi_reduction <maximumf>, %110, %cst_24 [2] : vector<4x8x8xf32> to vector<4x8xf32>
    %112 = vector.shape_cast %111 : vector<4x8xf32> to vector<4x8x1xf32>
    %113 = vector.broadcast %112 : vector<4x8x1xf32> to vector<4x8x8xf32>
    %114 = arith.subf %110, %113 : vector<4x8x8xf32>
    %115 = math.exp %114 : vector<4x8x8xf32>
    %cst_25 = arith.constant dense<0.000000e+00> : vector<4x8xf32>
    %116 = vector.multi_reduction <add>, %115, %cst_25 [2] : vector<4x8x8xf32> to vector<4x8xf32>
    %117 = vector.shape_cast %116 : vector<4x8xf32> to vector<4x8x1xf32>
    %118 = tpu.reciprocal %117 {approx = true} : vector<4x8x1xf32> -> vector<4x8x1xf32>
    %119 = vector.broadcast %118 : vector<4x8x1xf32> to vector<4x8x8xf32>
    %120 = arith.mulf %115, %119 : vector<4x8x8xf32>
    "tpu.trace_start"() <{level = 10 : i32, message = "hqk,hkd->hqd"}> : () -> ()
    %cst_26 = arith.constant dense<0.000000e+00> : vector<4x8x8xf32>
    %121 = tpu.matmul %120, %101, %cst_26 {dimension_numbers = #tpu.dot_dimension_numbers<[2], [1], [1], [2], [0, 0, 0, 1, 1, 2], [0], [0]>} : vector<4x8x8xf32>, vector<4x8x8xf32>, vector<4x8x8xf32> -> vector<4x8x8xf32>
    "tpu.trace_stop"() : () -> ()
    %122 = vector.extract_strided_slice %121 {offsets = [0, 0, 0], sizes = [1, 8, 8], strides = [1, 1, 1]} : vector<4x8x8xf32> to vector<1x8x8xf32>
    %123 = vector.shape_cast %122 : vector<1x8x8xf32> to vector<8x8xf32>
    %124 = vector.extract_strided_slice %121 {offsets = [1, 0, 0], sizes = [1, 8, 8], strides = [1, 1, 1]} : vector<4x8x8xf32> to vector<1x8x8xf32>
    %125 = vector.shape_cast %124 : vector<1x8x8xf32> to vector<8x8xf32>
    %126 = vector.extract_strided_slice %121 {offsets = [2, 0, 0], sizes = [1, 8, 8], strides = [1, 1, 1]} : vector<4x8x8xf32> to vector<1x8x8xf32>
    %127 = vector.shape_cast %126 : vector<1x8x8xf32> to vector<8x8xf32>
    %128 = vector.extract_strided_slice %121 {offsets = [3, 0, 0], sizes = [1, 8, 8], strides = [1, 1, 1]} : vector<4x8x8xf32> to vector<1x8x8xf32>
    %129 = vector.shape_cast %128 : vector<1x8x8xf32> to vector<8x8xf32>
    %130 = tpu.concatenate %123, %125, %127, %129 in 1 : vector<8x8xf32>, vector<8x8xf32>, vector<8x8xf32>, vector<8x8xf32> -> vector<8x32xf32>
    %c0_27 = arith.constant 0 : index
    %c0_28 = arith.constant 0 : index
    %131 = vector.load %arg5[%c0_27, %c0_28] : memref<32x32xf32, #tpu.memory_space<vmem>>, vector<32x32xf32>
    %cst_29 = arith.constant dense<0.000000e+00> : vector<8x32xf32>
    %132 = tpu.matmul %130, %131, %cst_29 {dimension_numbers = #tpu.dot_dimension_numbers<[1], [1], [0], [0], [0, 0, 1, 0], [], []>} : vector<8x32xf32>, vector<32x32xf32>, vector<8x32xf32> -> vector<8x32xf32>
    %c0_30 = arith.constant 0 : index
    %c0_31 = arith.constant 0 : index
    %133 = vector.load %arg6[%c0_30, %c0_31] : memref<1x32xf32, #tpu.memory_space<vmem>>, vector<1x32xf32>
    %134 = vector.broadcast %133 : vector<1x32xf32> to vector<8x32xf32>
    %135 = arith.addf %132, %134 : vector<8x32xf32>
    %c0_32 = arith.constant 0 : index
    %c0_33 = arith.constant 0 : index
    %c0_34 = arith.constant 0 : index
    %136 = vector.load %arg11[%c0_32, %c0_33, %c0_34] : memref<1x8x32xf32, #tpu.memory_space<vmem>>, vector<1x8x32xf32>
    %137 = vector.shape_cast %136 : vector<1x8x32xf32> to vector<8x32xf32>
    %138 = vector.shape_cast %135 : vector<8x32xf32> to vector<1x8x32xf32>
    tpu.vector_store %arg11[%c0_32, %c0_33, %c0_34], %138 {strides = array<i32>} : memref<1x8x32xf32, #tpu.memory_space<vmem>>, vector<1x8x32xf32>,
    return
  }
  func.func @transform_0(%arg0: i32) -> (i32, i32, i32) {
    %c0_i32 = arith.constant 0 : i32
    %c0_i32_0 = arith.constant 0 : i32
    %c0_i32_1 = arith.constant 0 : i32
    return %arg0, %c0_i32, %c0_i32_0 : i32, i32, i32
  }
  func.func @transform_1(%arg0: i32) -> (i32, i32, i32) {
    %c0_i32 = arith.constant 0 : i32
    %c0_i32_0 = arith.constant 0 : i32
    %c0_i32_1 = arith.constant 0 : i32
    return %arg0, %c0_i32, %c0_i32_0 : i32, i32, i32
  }
  func.func @transform_2(%arg0: i32) -> (i32, i32) {
    %c0_i32 = arith.constant 0 : i32
    %c0_i32_0 = arith.constant 0 : i32
    %c0_i32_1 = arith.constant 0 : i32
    return %c0_i32, %c0_i32_0 : i32, i32
  }
  func.func @transform_3(%arg0: i32) -> (i32, i32) {
    %c0_i32 = arith.constant 0 : i32
    %c0_i32_0 = arith.constant 0 : i32
    %c0_i32_1 = arith.constant 0 : i32
    return %c0_i32, %c0_i32_0 : i32, i32
  }
  func.func @transform_4(%arg0: i32) -> (i32, i32) {
    %c0_i32 = arith.constant 0 : i32
    %c0_i32_0 = arith.constant 0 : i32
    %c0_i32_1 = arith.constant 0 : i32
    return %c0_i32, %c0_i32_0 : i32, i32
  }
  func.func @transform_5(%arg0: i32) -> (i32, i32) {
    %c0_i32 = arith.constant 0 : i32
    %c0_i32_0 = arith.constant 0 : i32
    %c0_i32_1 = arith.constant 0 : i32
    return %c0_i32, %c0_i32_0 : i32, i32
  }
  func.func @transform_6(%arg0: i32) -> (i32, i32) {
    %c0_i32 = arith.constant 0 : i32
    %c0_i32_0 = arith.constant 0 : i32
    %c0_i32_1 = arith.constant 0 : i32
    return %c0_i32, %c0_i32_0 : i32, i32
  }
  func.func @transform_7(%arg0: i32) -> (i32, i32) {
    %c0_i32 = arith.constant 0 : i32
    %c0_i32_0 = arith.constant 0 : i32
    %c0_i32_1 = arith.constant 0 : i32
    return %c0_i32, %c0_i32_0 : i32, i32
  }
  func.func @transform_8(%arg0: i32) -> (i32, i32) {
    %c0_i32 = arith.constant 0 : i32
    %c0_i32_0 = arith.constant 0 : i32
    %c0_i32_1 = arith.constant 0 : i32
    return %c0_i32, %c0_i32_0 : i32, i32
  }
  func.func @transform_9(%arg0: i32) -> (i32, i32) {
    %c0_i32 = arith.constant 0 : i32
    %c0_i32_0 = arith.constant 0 : i32
    %c0_i32_1 = arith.constant 0 : i32
    return %c0_i32, %c0_i32_0 : i32, i32
  }
  func.func @transform_10(%arg0: i32) -> (i32, i32, i32) {
    %c0_i32 = arith.constant 0 : i32
    %c0_i32_0 = arith.constant 0 : i32
    %c0_i32_1 = arith.constant 0 : i32
    return %arg0, %c0_i32, %c0_i32_0 : i32, i32, i32
  }
}

</mosaic_0001>

<bundles_post_ra>
// kernel: tpu_custom_call.1
= control target key start
LH: loop header
LB: loop body
LE: loop exit
PB: predicated region body
PF: predicated region fallthrough
CT: control target
= control target key end

     0   :  { %15 = vsyncpa [#allocation3], 0  ;;  %s2266_s0 = inlined_call_operand.vmem [shape: f32[2,8,32], index: 0, kind: input, shape index: {}]   ;;  %s2267_s1 = inlined_call_operand.vmem [shape: f32[2,1,8], index: 1, kind: input, shape index: {}]   ;;  %s2268_s2 = inlined_call_operand.vmem [shape: f32[96,32], index: 2, kind: input, shape index: {}]   ;;  %s2269_s3 = inlined_call_operand.vmem [shape: f32[1,96], index: 3, kind: input, shape index: {}]   ;;  %s2270_s4 = inlined_call_operand.vmem [shape: f32[32,32], index: 4, kind: input, shape index: {}]   ;;  %s2271_s5 = inlined_call_operand.vmem [shape: f32[1,32], index: 5, kind: input, shape index: {}]   ;;  %s2272_s6 = inlined_call_operand.vmem [shape: f32[8,8], index: 6, kind: input, shape index: {}]   ;;  %s2273_s7 = inlined_call_operand.vmem [shape: f32[8,8], index: 7, kind: input, shape index: {}]   ;;  %s2274_s8 = inlined_call_operand.vmem [shape: f32[8,8], index: 8, kind: input, shape index: {}]   ;;  %s2275_s9 = inlined_call_operand.vmem [shape: f32[8,8], index: 9, kind: input, shape index: {}]   ;;  %s2276_s10 = inlined_call_operand.hbm [shape: f32[2,8,32], index: 10, kind: output, shape index: {}]  }
   0x1   :  { %17 = vsyncpa [#allocation3 + $0x1], 0  ;;  %s1933_s12 = smov 0   ;;  %s1935_s13 = smov 0  }
   0x2   :  { %s1937_s14 = smov 0   ;;  %s1939_s15 = smov 0  }
   0x3 LB: > { %s1954_s16 = sadd.s32 4294967295, %s1851_s15   ;;  %s1524_s17 = sadd.s32 4294967294, %s1851_s15   ;;  %s1851_s15 = sphi %s1939_s15, %s2284_s15   ;;  %s1847_s14 = sphi %s1937_s14, %s2283_s14   ;;  %s1843_s13 = sphi %s1935_s13, %s2282_s13   ;;  %s1839_s12 = sphi %s1933_s12, %s2281_s12  }
   0x4   : > { %s1958_s18 = sadd.s32 1, %s1851_s15   ;;  %s250_s19 = sadd.s32 1, %s1847_s14 }
   0x5   : > { %s247_s20 = ssub.s32 %s1851_s15, %s1958_s18  ;;  %p260_p0 = scmp.ne.s32.totalorder %s1847_s14, %s1843_s13 }
   0x6   : > { %p248_p1 = scmp.eq.s32.totalorder %s247_s20, 0  ;;  %p261_p2 = scmp.eq.s32.totalorder %s1954_s16, 1 }
   0x7   : > { %p266_p3 = scmp.ne.s32.totalorder %s1843_s13, %s1839_s12  ;;  %p267_p4 = scmp.eq.s32.totalorder %s1524_s17, 1 }
   0x8   : > { %s1969_s21 = scalar_select %p248_p1, %s1847_s14, %s250_s19  }
   0x9   : > { %p1971_p5 = por %p261_p2, %p260_p0  ;;  %p1975_p6 = por %p267_p4, %p266_p3 }
   0xa   : > { %p1527_p7 = scmp.ge.s32.totalorder %s1851_s15, 1  ;;  %p322_p8 = scmp.lt.s32.totalorder %s1851_s15, 3 }
   0xc   : > { %p323_p9 = pnand %p1527_p7, %p322_p8 }
   0xd   : > { %v370_v0 = vld [vmem:[%s2268_s2] sm:$0xff] (!%p323_p9)  ;;  %v371_v1 = vld [vmem:[%s2268_s2 + $0x8] sm:$0xff] (!%p323_p9)  ;;  %vm389_vm0 = vcmask (!%p323_p9), 261120   ;;  %v1853_v2 = vmov (!%p323_p9), 0.0|0.0   ;;  %vm1854_vm2 = vmmov (!%p323_p9), 0   ;;  %v1855_v5 = vmov (!%p323_p9), 0.0  }
   0xe   : > { %326 = sbr.rel (%p323_p9) target bundleno = 1870 (0x74e), region = 60  ;;  %1678 = vmatprep.subr.bf16.mxu0 (!%p323_p9), %v1853_v2  ;;  %v1679_v3 = vpack.c.bf16 (!%p323_p9), %v371_v1, %v370_v0  ;;  %vm1990_vm1 = vmpackc.low (!%p323_p9), %vm389_vm0, %vm389_vm0  ;;  %1624 = vmatprep.mubr.msk.f32.mxu0 (!%p323_p9), %vm1854_vm2, %v1855_v5  ;;  %v372_v6 = vld [vmem:[%s2268_s2 + $0x10] sm:$0xff] (!%p323_p9)  ;;  %v373_v7 = vld [vmem:[%s2268_s2 + $0x18] sm:$0xff] (!%p323_p9)  ;;  %p362_p10 = scmp.lt.s32.totalorder (!%p323_p9), %s1954_s16, 1  ;;  %vm513_vm3 = vcmask (!%p323_p9), 31744   ;;  %vm665_vm4 = vcmask (!%p323_p9), 64512  }
   0xf   : > { %1627 = vmatprep.subr.mxu1 (!%p323_p9), %v1855_v5  ;;  %1629 = vmatprep.mubr.msk.f32.mxu1 (!%p323_p9), %vm1854_vm2, %v1855_v5  ;;  %v1683_v8 = vpack.c.bf16 (!%p323_p9), %v373_v7, %v372_v6  ;;  %v374_v9 = vld [vmem:[%s2268_s2 + $0x20] sm:$0xff] (!%p323_p9)  ;;  %v375_v10 = vld [vmem:[%s2268_s2 + $0x28] sm:$0xff] (!%p323_p9)  ;;  %v376_v12 = vld [vmem:[%s2268_s2 + $0x30] sm:$0xff] (!%p323_p9)  ;;  %s1856_s30 = smov (!%p323_p9), 84   ;;  %s1857_s11 = smov (!%p323_p9), 76   ;;  %vm1341_vm6 = vcmask (!%p323_p9), 130048  }
  0x10   : > { %1681 = vmatpush3.bf16.xpose.msk.msra.mxu0 (!%p323_p9), %vm1990_vm1, %v1679_v3  ;;  %v1687_v11 = vpack.c.bf16 (!%p323_p9), %v375_v10, %v374_v9  ;;  %v377_v13 = vld [vmem:[%s2268_s2 + $0x38] sm:$0xff] (!%p323_p9)  ;;  %v378_v15 = vld [vmem:[%s2268_s2 + $0x40] sm:$0xff] (!%p323_p9)  ;;  %v379_v16 = vld [vmem:[%s2268_s2 + $0x48] sm:$0xff] (!%p323_p9)  ;;  %s1858_s17 = smov (!%p323_p9), 92   ;;  %s1859_s19 = smov (!%p323_p9), 68   ;;  %vm1343_vm7 = vcmask (!%p323_p9), 195584  }
  0x11   : > { %1682 = vmatprep.subr.bf16.mxu0 (!%p323_p9), %v1853_v2  ;;  %v1691_v14 = vpack.c.bf16 (!%p323_p9), %v377_v13, %v376_v12  ;;  %v1695_v17 = vpack.c.bf16 (!%p323_p9), %v379_v16, %v378_v15  ;;  %v380_v18 = vld [vmem:[%s2268_s2 + $0x50] sm:$0xff] (!%p323_p9)  ;;  %v381_v19 = vld [vmem:[%s2268_s2 + $0x58] sm:$0xff] (!%p323_p9)  ;;  %v1530_v22 = vld [vmem:[%s2269_s3] ss:$0 sm:$0xff] (!%p323_p9)  ;;  %s1861_s26 = smov (!%p323_p9), 40   ;;  %s1862_s27 = smov (!%p323_p9), 116  }
  0x12   : > { %v1699_v20 = vpack.c.bf16 (!%p323_p9), %v381_v19, %v380_v18  ;;  %v501_v27 = vld [vmem:[%s2274_s8] sm:$0xff] (!%p323_p9)  ;;  %s1864_s28 = smov (!%p323_p9), 108   ;;  %s1865_s29 = smov (!%p323_p9), 48  }
  0x13   : > { %v2083_v28 = vld [vmem:[%s2272_s6] sm:$0xff] (!%p323_p9)  ;;  %s1874_s20 = smov (!%p323_p9), 4  }
  0x14   : > { %v502_v33 = vld [vmem:[%s2275_s9] sm:$0xff] (!%p323_p9) }
  0x15   : > { %s363_s24 = scalar_select %p362_p10, %s1954_s16, 1  ;;  %v2097_v44 = vld [vmem:[%s2273_s7] sm:$0xff] }
  0x17   : > { %s1529_s25 = sshll.u32 %s363_s24, 3  ;;  %s1868_s24 = smov 8  }
  0x18   : > { %1685 = vmatpush3.bf16.xpose.msk.msra.mxu0 %vm1990_vm1, %v1683_v8  ;;  %s365_s1 = scalar_lea.vmem %s2266_s0, %s1529_s25  ;;  %s1860_s25 = smov 100  }
  0x19   : > { %1686 = vmatprep.subr.bf16.mxu0 %v1853_v2  ;;  %v369_v21 = vld [vmem:[%s365_s1] sm:$0xff]  ;;  %s1863_s1 = smov 124  }
  0x20   : > { %1689 = vmatpush3.bf16.xpose.msk.msra.mxu0 %vm1990_vm1, %v1687_v11 }
  0x21   : > { %1690 = vmatprep.subr.bf16.mxu0 %v1853_v2 }
  0x28   : > { %1693 = vmatpush3.bf16.xpose.msk.msra.mxu0 %vm1990_vm1, %v1691_v14 }
  0x29   : > { %1694 = vmatprep.subr.bf16.mxu0 %v1853_v2 }
  0x30   : > { %1697 = vmatpush3.bf16.xpose.msk.msra.mxu0 %vm1990_vm1, %v1695_v17 }
  0x31   : > { %1698 = vmatprep.subr.bf16.mxu0 %v1853_v2 }
  0x38   : > { %1701 = vmatpush3.bf16.xpose.msk.msra.mxu0 %vm1990_vm1, %v1699_v20 }
  0x3f   : > { %1625 = vmatmul.mubr.msk.f32.vlgmr.msra.gmra.mrb[0].mxu0 %vm389_vm0, %v369_v21 }
 0x112   : > { %v495_v23 = vpop.f32.mrb[0].mxu0 }
 0x113   : > { %v2055_v24 = vadd.f32 %v1530_v22, %v495_v23  ;;  %v1626_v25 = vpop.f32.mrb[1].mxu0 }
 0x115   : > { %594 = vrot.lane.b32.xlu1 %v2055_v24, %s1856_s30  ;;  %v2059_v26 = vsub.f32 0.0, %v2055_v24 }
 0x117   : > { %557 = vrot.lane.b32.xlu0 %v2059_v26, %s1856_s30  ;;  %s1866_s30 = smov 56  }
 0x119   : > { %591 = vrot.lane.b32.xlu1 %v2059_v26, %s1857_s11 }
 0x11b   : > { %560 = vrot.lane.b32.xlu0 %v2055_v24, %s1858_s17 }
 0x11d   : > { %628 = vrot.lane.b32.xlu1 %v2055_v24, %s1857_s11  ;;  %s1867_s11 = smov 32  }
 0x11f   : > { %625 = vrot.lane.b32.xlu0 %v2059_v26, %s1859_s19  ;;  %s1873_s19 = smov 104  }
 0x121   : > { %525 = vrot.lane.b32.xlu1 %v2055_v24, %s1860_s25 }
 0x123   : > { %553 = vrot.lane.b32.xlu0 %v501_v27, %s1861_s26 }
 0x125   : > { %540 = vrot.lane.b32.xlu1 %v2059_v26, %s1862_s27 }
 0x127   : > { %543 = vrot.lane.b32.xlu0 %v2055_v24, %s1863_s1 }
 0x129   : > { %574 = vrot.lane.b32.xlu1 %v2059_v26, %s1864_s28 }
 0x12b   : > { %522 = vrot.lane.b32.xlu0 %v2059_v26, %s1858_s17  ;;  %s1875_s17 = smov 96  }
 0x12d   : > { %608 = vrot.lane.b32.xlu1 %v2059_v26, %s1860_s25 }
 0x12f   : > { %587 = vrot.lane.b32.xlu0 %v501_v27, %s1865_s29 }
 0x133   : > { %577 = vrot.lane.b32.xlu0 %v2055_v24, %s1862_s27 }
 0x137   : > { %621 = vrot.lane.b32.xlu0 %v501_v27, %s1866_s30 }
 0x13b   : > { %611 = vrot.lane.b32.xlu0 %v2055_v24, %s1864_s28 }
 0x13f   : > { %518 = vrot.lane.b32.xlu0 %v501_v27, %s1867_s11 }
 0x143   : > { %536 = vrot.lane.b32.xlu0 %v2083_v28, %s1868_s24 }
 0x187   : > { %v595_v29 = vpop.permute.xlu1 %594 }
 0x189   : > { %v558_v30 = vpop.permute.xlu0 %557 }
 0x18b   : > { %v592_v31 = vpop.permute.xlu1 %591 }
 0x18c   : > { %v597_v37 = vsel %vm513_vm3, %v592_v31, %v595_v29 }
 0x18d   : > { %v561_v32 = vpop.permute.xlu0 %560  ;;  %v598_v39 = vmul.f32 %v597_v37, %v502_v33 }
 0x18e   : > { %v563_v34 = vsel %vm513_vm3, %v558_v30, %v561_v32 }
 0x18f   : > { %v564_v35 = vmul.f32 %v563_v34, %v502_v33  ;;  %v629_v36 = vpop.permute.xlu1 %628 }
 0x191   : > { %566 = vrot.lane.b32.xlu1 %v564_v35, %s1861_s26  ;;  %v626_v38 = vpop.permute.xlu0 %625  ;;  %s1869_s26 = smov 16   ;;  %v503_v35 = vmul.f32 %v2083_v28, %v2055_v24 }
 0x192   : > { %v631_v41 = vsel %vm513_vm3, %v626_v38, %v629_v36 }
 0x193   : > { %v526_v40 = vpop.permute.xlu1 %525  ;;  %v632_v43 = vmul.f32 %v631_v41, %v502_v33 }
 0x195   : > { %600 = vrot.lane.b32.xlu1 %v598_v39, %s1865_s29  ;;  %v554_v42 = vpop.permute.xlu0 %553  ;;  %s1870_s29 = smov 120  }
 0x196   : > { %v556_v57 = vmul.f32 %v554_v42, %v2055_v24 }
 0x197   : > { %v541_v45 = vpop.permute.xlu1 %540 }
 0x199   : > { %634 = vrot.lane.b32.xlu1 %v632_v43, %s1866_s30  ;;  %v544_v46 = vpop.permute.xlu0 %543  ;;  %s1871_s30 = smov 112   ;;  %v969_v43 = vlaneseq }
 0x19a   : > { %v546_v47 = vsel %vm513_vm3, %v541_v45, %v544_v46 }
 0x19b   : > { %v547_v48 = vmul.f32 %v546_v47, %v2097_v44  ;;  %v575_v53 = vpop.permute.xlu1 %574  ;;  %v972_v45 = vand.u32 127, %v969_v43 }
 0x19d   : > { %549 = vrot.lane.b32.xlu0 %v547_v48, %s1868_s24  ;;  %v523_v49 = vpop.permute.xlu0 %522 }
 0x19e   : > { %v528_v50 = vsel %vm513_vm3, %v523_v49, %v526_v40 }
 0x19f   : > { %v529_v51 = vmul.f32 %v528_v50, %v502_v33  ;;  %v609_v55 = vpop.permute.xlu1 %608 }
 0x1a1   : > { %531 = vrot.lane.b32.xlu1 %v529_v51, %s1867_s11  ;;  %v588_v52 = vpop.permute.xlu0 %587  ;;  %s1872_s11 = smov 24  }
 0x1a2   : > { %v590_v62 = vmul.f32 %v588_v52, %v2055_v24 }
 0x1a5   : > { %570 = vrot.lane.b32.xlu1 %v2083_v28, %s1869_s26  ;;  %v578_v54 = vpop.permute.xlu0 %577 }
 0x1a6   : > { %v580_v60 = vsel %vm513_vm3, %v575_v53, %v578_v54 }
 0x1a7   : > { %v581_v0 = vmul.f32 %v580_v60, %v2097_v44 }
 0x1a9   : > { %v622_v56 = vpop.permute.xlu0 %621 }
 0x1aa   : > { %v624_v3 = vmul.f32 %v622_v56, %v2055_v24 }
 0x1ad   : > { %v612_v61 = vpop.permute.xlu0 %611 }
 0x1ae   : > { %v614_v9 = vsel %vm513_vm3, %v609_v55, %v612_v61 }
 0x1af   : > { %v615_v10 = vmul.f32 %v614_v9, %v2097_v44 }
 0x1b1   : > { %v519_v6 = vpop.permute.xlu0 %518 }
 0x1b2   : > { %v521_v12 = vmul.f32 %v519_v6, %v2055_v24 }
 0x1b5   : > { %v537_v11 = vpop.permute.xlu0 %536 }
 0x1b6   : > { %v539_v16 = vmul.f32 %v537_v11, %v2055_v24 }
 0x203   : > { %v567_v58 = vpop.permute.xlu1 %566 }
 0x204   : > { %v569_v59 = vadd.f32 %v567_v58, %v556_v57 }
 0x206   : > { %648 = vrot.lane.b32.xlu1 %v569_v59, %s1870_s29 }
 0x207   : > { %v601_v63 = vpop.permute.xlu1 %600 }
 0x208   : > { %v603_v1 = vadd.f32 %v601_v63, %v590_v62 }
 0x20a   : > { %651 = vrot.lane.b32.xlu0 %v603_v1, %s1871_s30  ;;  %583 = vrot.lane.b32.xlu1 %v581_v0, %s1869_s26 }
 0x20b   : > { %v635_v7 = vpop.permute.xlu1 %634 }
 0x20c   : > { %v637_v8 = vadd.f32 %v635_v7, %v624_v3 }
 0x20e   : > { %604 = vrot.lane.b32.xlu0 %v2083_v28, %s1872_s11  ;;  %654 = vrot.lane.b32.xlu1 %v637_v8, %s1873_s19 }
 0x20f   : > { %v550_v15 = vpop.permute.xlu0 %549 }
 0x210   : > { %v552_v17 = vadd.f32 %v550_v15, %v539_v16 }
 0x212   : > { %506 = vrot.lane.b32.xlu1 %v2059_v26, %s1863_s1  ;;  %617 = vrot.lane.b32.xlu0 %v615_v10, %s1872_s11  ;;  %s1876_s1 = smov 64  }
 0x213   : > { %v532_v13 = vpop.permute.xlu1 %531 }
 0x214   : > { %v534_v14 = vadd.f32 %v532_v13, %v521_v12 }
 0x216   : > { %510 = vrot.lane.b32.xlu0 %v2055_v24, %s1874_s20  ;;  %663 = vrot.lane.b32.xlu1 %v534_v14, %s1875_s17 }
 0x217   : > { %v571_v18 = vpop.permute.xlu1 %570 }
 0x218   : > { %v573_v20 = vmul.f32 %v571_v18, %v2055_v24 }
 0x21a   : > { %639 = vrot.lane.b32.xlu1 %v552_v17, %s1870_s29 }
 0x278   : > { %v649_v19 = vpop.permute.xlu1 %648 }
 0x279   : > { %741 = vrot.lane.b32.xlu0 %v649_v19, %s1875_s17 }
 0x27c   : > { %v584_v21 = vpop.permute.xlu1 %583  ;;  %v652_v22 = vpop.permute.xlu0 %651 }
 0x27d   : > { %v586_v23 = vadd.f32 %v584_v21, %v573_v20  ;;  %817 = vrot.lane.b32.xlu0 %v652_v22, %s1875_s17 }
 0x27f   : > { %642 = vrot.lane.b32.xlu1 %v586_v23, %s1871_s30 }
 0x280   : > { %v655_v25 = vpop.permute.xlu1 %654  ;;  %v605_v26 = vpop.permute.xlu0 %604 }
 0x281   : > { %893 = vrot.lane.b32.xlu0 %v655_v25, %s1875_s17  ;;  %v607_v27 = vmul.f32 %v605_v26, %v2055_v24 }
 0x284   : > { %v507_v29 = vpop.permute.xlu1 %506  ;;  %v618_v30 = vpop.permute.xlu0 %617 }
 0x285   : > { %v620_v31 = vadd.f32 %v618_v30, %v607_v27 }
 0x287   : > { %645 = vrot.lane.b32.xlu1 %v620_v31, %s1873_s19 }
 0x288   : > { %v664_v32 = vpop.permute.xlu1 %663  ;;  %v511_v33 = vpop.permute.xlu0 %510 }
 0x289   : > { %v514_v34 = vsel %vm513_vm3, %v507_v29, %v511_v33  ;;  %1628 = vmatpush3.xpose.msk.msra.mxu1 %vm665_vm4, %v664_v32 }
 0x28a   : > { %v515_v36 = vmul.f32 %v514_v34, %v2097_v44  ;;  %1632 = vmatprep.subr.mxu1 %v1855_v5  ;;  %v970_v44 = vshrl.u32 %v969_v43, 7  ;;  %v1347_v43 = vld [vmem:[%s2270_s4 + $0x10] sm:$0xff] }
 0x28c   : > { %v516_v37 = vadd.f32 %v515_v36, %v503_v35  ;;  %v640_v39 = vpop.permute.xlu1 %639  ;;  %vm973_vm5 = vcmp.le.s32.totalorder %v972_v45, %v970_v44 }
 0x28e   : > { %1630 = vmatmul.mubr.msk.f32.vlgmr.msra.gmra.mrb[0].mxu1 %vm665_vm4, %v516_v37 }
 0x28f   : > { %1634 = vmatprep.mubr.msk.f32.mxu1 %vm1854_vm2, %v1855_v5 }
 0x2eb   : > { %v742_v38 = vpop.permute.xlu0 %741 }
 0x2ec   : > { %1633 = vmatpush3.xpose.msk.msra.mxu1 %vm665_vm4, %v742_v38 }
 0x2ed   : > { %1637 = vmatprep.subr.mxu1 %v1855_v5 }
 0x2ef   : > { %v818_v40 = vpop.permute.xlu0 %817  ;;  %1635 = vmatmul.mubr.msk.f32.vlgmr.msra.gmra.mrb[2].mxu1 %vm665_vm4, %v640_v39 }
 0x2f0   : > { %1638 = vmatpush3.xpose.msk.msra.mxu1 %vm665_vm4, %v818_v40  ;;  %1639 = vmatprep.mubr.msk.f32.mxu1 %vm1854_vm2, %v1855_v5 }
 0x2f1   : > { %v643_v28 = vpop.permute.xlu1 %642  ;;  %1642 = vmatprep.subr.mxu1 %v1855_v5 }
 0x2f3   : > { %v894_v41 = vpop.permute.xlu0 %893  ;;  %1640 = vmatmul.mubr.msk.f32.vlgmr.msra.gmra.mrb[4].mxu1 %vm665_vm4, %v643_v28  ;;  %v1345_v28 = vld [vmem:[%s2270_s4] sm:$0xff] }
 0x2f4   : > { %1643 = vmatpush3.xpose.msk.msra.mxu1 %vm665_vm4, %v894_v41  ;;  %1644 = vmatprep.mubr.msk.f32.mxu1 %vm1854_vm2, %v1855_v5  ;;  %v1346_v41 = vld [vmem:[%s2270_s4 + $0x8] sm:$0xff] }
 0x2f5   : > { %1647 = vmatprep.subr.mxu1 %v1855_v5 }
 0x2f9   : > { %v646_v42 = vpop.permute.xlu1 %645 }
 0x2fa   : > { %1645 = vmatmul.mubr.msk.f32.vlgmr.msra.gmra.mrb[6].mxu1 %vm665_vm4, %v646_v42  ;;  %v1703_v42 = vpack.c.bf16 %v1346_v41, %v1345_v28 }
 0x2fb   : > { %1649 = vmatprep.mubr.msk.f32.mxu1 %vm1854_vm2, %v1855_v5 }
 0x361   : > { %v737_v46 = vpop.f32.mrb[0].mxu1 }
 0x362   : > { %v976_v47 = vsel %vm973_vm5, %v737_v46, -1e+30  ;;  %v1631_v48 = vpop.f32.mrb[1].mxu1 }
 0x363   : > { %v980_v49 = vsel %vm665_vm4, %v976_v47, -inf }
 0x364   : > { %981 = vmax.xlane.f32.xlu0 %v980_v49 }
 0x3c2   : > { %v813_v50 = vpop.f32.mrb[2].mxu1 }
 0x3c3   : > { %v977_v51 = vsel %vm973_vm5, %v813_v50, -1e+30  ;;  %v1636_v52 = vpop.f32.mrb[3].mxu1 }
 0x3c4   : > { %v983_v53 = vsel %vm665_vm4, %v977_v51, -inf }
 0x3c5   : > { %984 = vmax.xlane.f32.xlu1 %v983_v53 }
 0x3c6   : > { %v889_v54 = vpop.f32.mrb[4].mxu1 }
 0x3c7   : > { %v978_v55 = vsel %vm973_vm5, %v889_v54, -1e+30  ;;  %v1641_v56 = vpop.f32.mrb[5].mxu1 }
 0x3c8   : > { %v986_v57 = vsel %vm665_vm4, %v978_v55, -inf }
 0x3c9   : > { %987 = vmax.xlane.f32.xlu0 %v986_v57  ;;  %v1556_v57 = vld [vmem:[%s2271_s5] ss:$0 sm:$0xff] }
 0x3cd   : > { %v965_v58 = vpop.f32.mrb[6].mxu1 }
 0x3ce   : > { %v979_v59 = vsel %vm973_vm5, %v965_v58, -1e+30  ;;  %v1646_v60 = vpop.f32.mrb[7].mxu1 }
 0x3cf   : > { %v989_v61 = vsel %vm665_vm4, %v979_v59, -inf }
 0x3d0   : > { %990 = vmax.xlane.f32.xlu0 %v989_v61 }
 0x3d6   : > { %656 = vrot.lane.b32.xlu1 %v2055_v24, %s1870_s29 }
 0x3da   : > { %660 = vrot.lane.b32.xlu1 %v2055_v24, %s1873_s19 }
 0x3e6   : > { %658 = vrot.lane.b32.xlu0 %v2055_v24, %s1871_s30 }
 0x3ea   : > { %1024 = vrot.lane.b32.xlu0 %v2055_v24, %s1876_s1 }
 0x3f1   : > { %v982_v62 = vpop.xlane.xlu0 %981 }
 0x3f2   : > { %v992_v24 = vsub.f32 %v976_v47, %v982_v62 }
 0x3f4   : > { %v996_v16 = vmul.f32 1.442695, %v992_v24 }
 0x452   : > { %v985_v63 = vpop.xlane.xlu1 %984 }
 0x453   : > { %v993_v0 = vsub.f32 %v977_v51, %v985_v63 }
 0x455   : > { %v998_v1 = vmul.f32 1.442695, %v993_v0 }
 0x456   : > { %v657_v3 = vpop.permute.xlu1 %656  ;;  %v988_v6 = vpop.xlane.xlu0 %987 }
 0x457   : > { %1773 = vpow2.f32 %v998_v1  ;;  %v994_v7 = vsub.f32 %v978_v55, %v988_v6  ;;  %1100 = vrot.lane.b32.xlu1 %v657_v3, %s1876_s1 }
 0x459   : > { %v1000_v8 = vmul.f32 1.442695, %v994_v7 }
 0x45a   : > { %v661_v22 = vpop.permute.xlu1 %660 }
 0x45b   : > { %1775 = vpow2.f32 %v1000_v8 }
 0x45c   : > { %1777 = vpow2.f32 %v996_v16 }
 0x45d   : > { %v991_v9 = vpop.xlane.xlu0 %990 }
 0x45e   : > { %v995_v17 = vsub.f32 %v979_v59, %v991_v9 }
 0x460   : > { %v1002_v18 = vmul.f32 1.442695, %v995_v17 }
 0x461   : > { %v1774_v10 = vpop.eup %1773  ;;  %v659_v11 = vpop.permute.xlu0 %658 }
 0x462   : > { %v1007_v12 = vsel %vm665_vm4, %v1774_v10, 0.0  ;;  %1779 = vpow2.f32 %v1002_v18 }
 0x463   : > { %1008 = vadd.xlane.f32.xlu0 %v1007_v12 }
 0x465   : > { %v1776_v13 = vpop.eup %1775  ;;  %v1025_v14 = vpop.permute.xlu0 %1024 }
 0x466   : > { %1648 = vmatpush3.msra.mxu1 %v1025_v14  ;;  %v1010_v15 = vsel %vm665_vm4, %v1776_v13, 0.0  ;;  %v1778_v19 = vpop.eup %1777 }
 0x467   : > { %1011 = vadd.xlane.f32.xlu0 %v1010_v15  ;;  %1652 = vmatprep.subr.mxu1 %v1855_v5  ;;  %v1004_v20 = vsel %vm665_vm4, %v1778_v19, 0.0 }
 0x46c   : > { %v1780_v21 = vpop.eup %1779 }
 0x46d   : > { %v1013_v23 = vsel %vm665_vm4, %v1780_v21, 0.0 }
 0x47b   : > { %1005 = vadd.xlane.f32.xlu1 %v1004_v20 }
 0x47d   : > { %1252 = vrot.lane.b32.xlu0 %v661_v22, %s1876_s1 }
 0x47f   : > { %1014 = vadd.xlane.f32.xlu1 %v1013_v23 }
 0x490   : > { %1176 = vrot.lane.b32.xlu1 %v659_v11, %s1876_s1 }
 0x4c9   : > { %v1101_v25 = vpop.permute.xlu1 %1100 }
 0x4f0   : > { %v1009_v26 = vpop.xlane.xlu0 %1008 }
 0x4f4   : > { %v1012_v29 = vpop.xlane.xlu0 %1011 }
 0x4f8   : > { %v1253_v39 = vpop.permute.xlu0 %1252 }
 0x508   : > { %v1006_v27 = vpop.xlane.xlu1 %1005 }
 0x509   : > { %1781 = vrcp.f32 %v1006_v27 }
 0x50a   : > { %1783 = vrcp.f32 %v1009_v26 }
 0x50b   : > { %1785 = vrcp.f32 %v1012_v29 }
 0x50c   : > { %v1015_v30 = vpop.xlane.xlu1 %1014 }
 0x50d   : > { %1787 = vrcp.f32 %v1015_v30 }
 0x510   : > { %v1177_v36 = vpop.permute.xlu1 %1176 }
 0x513   : > { %v1782_v31 = vpop.eup %1781 }
 0x514   : > { %v1020_v32 = vmul.f32 %v1782_v31, %v1778_v19  ;;  %v1784_v33 = vpop.eup %1783 }
 0x515   : > { %v1021_v34 = vmul.f32 %v1784_v33, %v1774_v10  ;;  %v1786_v35 = vpop.eup %1785 }
 0x516   : > { %1650 = vmatmul.mubr.msk.f32.vlgmr.msra.gmra.mrb[8].mxu1 %vm665_vm4, %v1020_v32  ;;  %v1022_v37 = vmul.f32 %v1786_v35, %v1776_v13 }
 0x517   : > { %1653 = vmatpush3.msra.mxu1 %v1101_v25  ;;  %1654 = vmatprep.mubr.msk.f32.mxu1 %vm1854_vm2, %v1855_v5  ;;  %v1788_v38 = vpop.eup %1787 }
 0x518   : > { %1657 = vmatprep.subr.mxu1 %v1855_v5  ;;  %v1023_v40 = vmul.f32 %v1788_v38, %v1780_v21 }
 0x51a   : > { %1655 = vmatmul.mubr.msk.f32.vlgmr.msra.gmra.mrb[10].mxu1 %vm665_vm4, %v1021_v34 }
 0x51b   : > { %1658 = vmatpush3.msra.mxu1 %v1177_v36  ;;  %1659 = vmatprep.mubr.msk.f32.mxu1 %vm1854_vm2, %v1855_v5 }
 0x51c   : > { %1662 = vmatprep.subr.mxu1 %v1855_v5 }
 0x51e   : > { %1660 = vmatmul.mubr.msk.f32.vlgmr.msra.gmra.mrb[12].mxu1 %vm665_vm4, %v1022_v37 }
 0x51f   : > { %1663 = vmatpush3.msra.mxu1 %v1253_v39  ;;  %1664 = vmatprep.mubr.msk.f32.mxu1 %vm1854_vm2, %v1855_v5 }
 0x520   : > { %1702 = vmatprep.subr.bf16.mxu1 %v1853_v2 }
 0x522   : > { %1665 = vmatmul.mubr.msk.f32.vlgmr.msra.gmra.mrb[14].mxu1 %vm665_vm4, %v1023_v40 }
 0x523   : > { %1675 = vmatprep.mubr.msk.f32.mxu1 %vm1854_vm2, %v1855_v5  ;;  %v1348_v5 = vld [vmem:[%s2270_s4 + $0x18] sm:$0xff] }
 0x524   : > { %v1707_v44 = vpack.c.bf16 %v1348_v5, %v1347_v43 }
 0x526   : > { %1705 = vmatpush3.bf16.xpose.msk.msra.mxu1 %vm1990_vm1, %v1703_v42 }
 0x527   : > { %1706 = vmatprep.subr.bf16.mxu1 %v1853_v2 }
 0x52e   : > { %1709 = vmatpush3.bf16.xpose.msk.msra.mxu1 %vm1990_vm1, %v1707_v44 }
 0x5e9   : > { %v1096_v45 = vpop.f32.mrb[8].mxu1 }
 0x5ea   : > { %v1651_v46 = vpop.f32.mrb[9].mxu1 }
 0x5ed   : > { %v1172_v47 = vpop.f32.mrb[10].mxu1 }
 0x5ee   : > { %1329 = vrot.lane.b32.xlu1 %v1172_v47, %s1868_s24  ;;  %v1656_v48 = vpop.f32.mrb[11].mxu1  ;;  %s359_s24 = sand.u32 1, %s1843_s13  }
 0x5ef   : > { %s1443_s20 = scalar_lea.sflag [#allocation3], %s359_s24 }
 0x5f1   : > { %v1248_v2 = vpop.f32.mrb[12].mxu1 }
 0x5f2   : > { %1333 = vrot.lane.b32.xlu0 %v1248_v2, %s1869_s26  ;;  %v1661_v49 = vpop.f32.mrb[13].mxu1  ;;  %s1528_s26 = sshll.u32 %s359_s24, 3 }
 0x5f3   : > { %s361_s27 = scalar_lea.vmem [#allocation2], %s1528_s26 }
 0x5f4   : > { %s1456_s28 = sshll.u32 %s361_s27, 4  ;;  %s2225_s28 = int_to_ptr.vmem [resolvable:$true] %s1456_s28 }
 0x5f5   : > { %v1324_v50 = vpop.f32.mrb[14].mxu1  ;;  %s1789_s17 = scalar_lea.vmem %s2225_s28, 128 }
 0x5f6   : > { %1337 = vrot.lane.b32.xlu1 %v1324_v50, %s1872_s11  ;;  %v1666_v51 = vpop.f32.mrb[15].mxu1  ;;  %s1563_s11 = sshll.u32 %s1954_s16, 7  ;;  %p1790_p11 = scmp.ne.s32.totalorder %s2225_s28, %s1789_s17 }
 0x5f7   : > { %s2223_s19 = scalar_lea.hbm %s2276_s10, %s1563_s11  ;;  %s1877_s16 = smov [#allocation2]  }
 0x5f8   : > { %p1791_p12 = pnand %p1790_p11, %p1971_p5  ;;  %s1793_s26 = sshll.u32 %s1877_s16, 4  ;;  %s1794_s26 = int_to_ptr.vmem [resolvable:$false] %s1793_s26 }
 0x5f9   : > { %s1795_s1 = scalar_lea.vmem %s1794_s26, 256  ;;  %p1796_p0 = scmp.lt.s32.totalorder %s2225_s28, %s1794_s26 }
 0x5fa   : > { %p1792_p13 = pneg %p1791_p12  ;;  %p1797_p1 = scmp.lt.s32.totalorder %s1795_s1, %s1789_s17 }
 0x5fc   : > { %p1798_p2 = por %p1797_p1, %p1796_p0 }
 0x5fe   : > { %p1799_p3 = pnand %p1798_p2, %p1792_p13 }
 0x660   : > { %v1330_v52 = vpop.permute.xlu1 %1329 }
 0x661   : > { %v1340_v53 = vsel %vm665_vm4, %v1096_v45, %v1330_v52 }
 0x664   : > { %v1334_v4 = vpop.permute.xlu0 %1333 }
 0x665   : > { %v1342_v54 = vsel %vm1341_vm6, %v1340_v53, %v1334_v4 }
 0x668   : > { %v1338_v55 = vpop.permute.xlu1 %1337 }
 0x669   : > { %v1344_v56 = vsel %vm1343_vm7, %v1342_v54, %v1338_v55 }
 0x66a   : > { %1676 = vmatmul.mubr.msk.f32.vlgmr.msra.gmra.mrb[16].mxu1 %vm389_vm0, %v1344_v56 }
 0x73d   : > { %v1437_v58 = vpop.f32.mrb[16].mxu1 }
 0x73e   : > { %v1438_v59 = vadd.f32 %v1556_v57, %v1437_v58  ;;  %v1677_v60 = vpop.f32.mrb[17].mxu1 }
 0x740   : > { %1441 = vst.msk [vmem:[%s361_s27] sm:$0xff] %vm389_vm0, %v1438_v59 }
 0x741   : > { %1802 = shalt.err (!%p1799_p3)
}
 0x742   : > { %s1803_s24 = scalar_lea.hbm %s2223_s19, 128  ;;  %s1807_s27 = scalar_lea.hbm %s2276_s10, 256 }
 0x743   : > { %p1804_p4 = scmp.ne.s32.totalorder %s2223_s19, %s1803_s24  ;;  %p1808_p9 = scmp.lt.u32.totalorder %s2223_s19, %s2276_s10 }
 0x744   : > { %p1809_p10 = scmp.lt.u32.totalorder %s1807_s27, %s1803_s24  ;;  %p1811_p12 = scmp.lt.u32.totalorder %s1803_s24, %s2223_s19 }
 0x745   : > { %p1805_p7 = pnand %p1804_p4, %p1971_p5 }
 0x746   : > { %p1810_p11 = por %p1809_p10, %p1808_p9 }
 0x747   : > { %p1806_p8 = pneg %p1805_p7 }
 0x748   : > { %p1812_p13 = por %p1811_p12, %p1810_p11 }
 0x74a   : > { %p1813_p0 = pnand %p1812_p13, %p1806_p8 }
 0x74c   : > { %1816 = shalt.err (!%p1813_p0)
}
 0x74d   : > { %1710 = dma.vmem_to_hbm [thread:$0]  (%p1971_p5), %s2225_s28, 128, %s2223_s19, %s1443_s20  }
 0x74e PF: > { %p1716_p1 = scmp.ge.s32.totalorder %s1851_s15, 2  ;;  %s1468_s17 = sand.u32 1, %s1839_s12  }
 0x74f   : > { %s1469_s16 = scalar_lea.sflag [#allocation3], %s1468_s17 }
 0x750   : > { %p1713_p2 = pnand %p1716_p1, %p1975_p6 }
 0x752   : > { %1834 = dma.done.wait (!%p1713_p2), %s1469_s16, 128  }
 0x753   : > { %1836 = vsyncadd (!%p1713_p2), %s1469_s16, 4294967168  ;;  %p20_p3 = scmp.ge.s32.totalorder %s1958_s18, 4   ;;  %s2281_s12 = smov %s1843_s13 }
 0x754   : > { %s2282_s13 = smov %s1847_s14  ;;  %s2283_s14 = smov %s1969_s21 }
 0x755   : > { %s2284_s15 = smov %s1958_s18  ;;  %22 = sbr.rel (!%p20_p3) target bundleno = 3 (0x3), region = 98 }
 0x75c   :  { %1474 = vsyncpa [#allocation3], 1 }
 0x75d   :  { %1476 = vsyncpa [#allocation3 + $0x1], 1 }

</bundles_post_ra>
